<compile_context>
chip_gen: v6e
topology: v6e:2x2x1
jax: 0.10.0
libtpu: 0.0.40
codegen_flags: <defaults>
</compile_context>

<pallas_src>
import functools
from typing import NamedTuple

import jax
import jax.numpy as jnp
import numpy as np
from jax import lax
from jax.experimental import pallas as pl
from jax.experimental.pallas import tpu as pltpu


# ----------------------------- static layout --------------------------------

class Layout(NamedTuple):
    """Static shape/offset info baked into the kernel (hashable -> jit-static)."""
    B: int        # batch
    KK: int       # kernel_size ** 2
    M1: int       # B * H1 * W1  (layer-1 output rows / gather width)
    K1: int       # C_in * k * k (layer-1 patch width)
    C1: int       # conv1 out channels (16)
    M2: int       # B * H2 * W2  (layer-2 output rows)
    C2: int       # conv2 out channels (32)
    C3: int       # conv3 out channels (32)
    OUT: int      # head outputs
    off_g2: int   # row offsets inside the packed constants buffer
    off_w2: int
    off_w3: int
    off_w1: int
    off_wh: int
    off_s: int


# ------------------------------ Pallas kernel -------------------------------

def _tron_dqn_kernel(L: Layout, p1_ref, c_ref, o_ref, p2_ref, yf_ref):
    """Fused conv1..conv3 (+folded BN, ReLU) + linear head.  5 matmuls total.

    p1_ref : (M1, K1) layer-1 im2col patches.
    c_ref  : (R, 128) packed constants (G2, W2cat, W3flat, w1, whT, shifts).
    o_ref  : (B, OUT) Q-values.
    p2_ref : VMEM scratch (M2, KK*C1)  -- layer-2 relayout buffer.
    yf_ref : VMEM scratch (B, KK*C2)   -- layer-3 flatten buffer.
    """
    f32 = jnp.float32

    # ---- layer 1: one matmul (BN folded into w1 / s1) ----
    w1 = c_ref[L.off_w1:L.off_w1 + L.K1, 0:L.C1]                 # (K1, C1)
    s1 = c_ref[L.off_s + 0:L.off_s + 1, 0:L.C1]                  # (1, C1)
    y1 = jnp.maximum(
        jnp.dot(p1_ref[...], w1, preferred_element_type=f32) + s1, 0.0)

    # ---- layer 2: stacked gather matmul + one weight matmul ----
    # G2 rows are tap-major (t*M2 + m2), output rows m2 are spatial-major
    # (sp*B + b).  The (KK*M2, C1) -> (M2, KK*C1) relayout is 9 static
    # sub-block stores into a scratch ref (cheap vst work, no MXU pushes).
    g2 = c_ref[L.off_g2:L.off_g2 + L.KK * L.M2, 0:L.M1]          # (KK*M2, M1)
    p = jnp.dot(g2, y1, preferred_element_type=f32)              # (KK*M2, C1)
    for t in range(L.KK):                                        # static unroll
        p2_ref[:, t * L.C1:(t + 1) * L.C1] = p[t * L.M2:(t + 1) * L.M2, :]
    w2 = c_ref[L.off_w2:L.off_w2 + L.KK * L.C1, 0:L.C2]          # (KK*C1, C2)
    s2 = c_ref[L.off_s + 1:L.off_s + 2, 0:L.C2]
    y2 = jnp.maximum(
        jnp.dot(p2_ref[...], w2, preferred_element_type=f32) + s2, 0.0)

    # ---- layer 3: final map is 1x1 spatial -> flatten + single matmul ----
    # y2 rows are spatial-major, so each spatial position is a contiguous
    # B-row block; 9 static sub-block stores build the (B, KK*C2) flatten.
    for sp in range(L.KK):                                       # static unroll
        yf_ref[:, sp * L.C2:(sp + 1) * L.C2] = y2[sp * L.B:(sp + 1) * L.B, :]
    w3 = c_ref[L.off_w3:L.off_w3 + L.KK * L.C2, 0:L.C3]          # (KK*C2, C3)
    s3 = c_ref[L.off_s + 2:L.off_s + 3, 0:L.C3]
    y3 = jnp.maximum(
        jnp.dot(yf_ref[...], w3, preferred_element_type=f32) + s3, 0.0)

    # ---- linear head ----
    wh = c_ref[L.off_wh:L.off_wh + L.C3, 0:L.OUT]                # (C3, OUT)
    bh = c_ref[L.off_s + 3:L.off_s + 4, 0:L.OUT]
    o_ref[...] = (jnp.dot(y3, wh, preferred_element_type=f32)
                  + bh).astype(o_ref.dtype)


# ------------------------------- glue (JAX) ---------------------------------

def conv2d_size_out(size, kernel_size, stride):
    return (size - (kernel_size - 1) - 1) // stride + 1


def _round_up(n, m):
    return (n + m - 1) // m * m


def _im2col(x, k, stride):
    """x: (B, C, H, W) NCHW -> patches (B*Ho*Wo, C*k*k) in (c, kh, kw) order.

    Only pre-kernel layout op; doubles as the NCHW public-boundary conversion.
    """
    B, C, H, W = x.shape
    Ho = (H - k) // stride + 1
    Wo = (W - k) // stride + 1
    cols = []
    for di in range(k):
        for dj in range(k):
            cols.append(x[:, :, di:di + stride * Ho:stride,
                             dj:dj + stride * Wo:stride])       # (B,C,Ho,Wo)
    cols = jnp.stack(cols, axis=0).reshape(k, k, B, C, Ho, Wo)
    cols = cols.transpose(2, 4, 5, 3, 0, 1)                     # (B,Ho,Wo,C,kh,kw)
    return cols.reshape(B * Ho * Wo, C * k * k)


@functools.partial(jax.jit, static_argnames=("layout", "kernel_size", "stride"))
def tron_dqn_forward(x, consts, *, layout, kernel_size, stride):
    """x: (B, C_in, H, W) NCHW -> (B, outputs) Q-values."""
    patches1 = _im2col(x, kernel_size, stride)
    vmem = pl.BlockSpec(memory_space=pltpu.MemorySpace.VMEM)
    return pl.pallas_call(
        functools.partial(_tron_dqn_kernel, layout),
        out_shape=jax.ShapeDtypeStruct((layout.B, layout.OUT), jnp.float32),
        in_specs=[vmem, vmem],
        out_specs=vmem,
        scratch_shapes=[
            pltpu.VMEM((layout.M2, layout.KK * layout.C1), jnp.float32),
            pltpu.VMEM((layout.B, layout.KK * layout.C2), jnp.float32),
        ],
        # Plenty of headroom at these shapes (<1 MB working set); resize when
        # the same kernel is reused at DQN replay batch sizes.
        compiler_params=pltpu.CompilerParams(vmem_limit_bytes=32 * 1024 * 1024),
    )(patches1, consts)


# ------------------------- parameter preparation ----------------------------

def prepare_params(params, batch, height, width, kernel_size, stride):
    """Fold BN, pre-layout all weights, build the gather constant, and pack
    everything into ONE lane-padded f32 buffer (done once, in numpy)."""
    k = kernel_size

    def fold(p):
        w = np.asarray(p["w"], np.float32)
        scale = np.asarray(p["scale"], np.float32)
        shift = np.asarray(p["shift"], np.float32)
        b = np.asarray(p["b"], np.float32)
        return w * scale[:, None, None, None], b * scale + shift

    h1 = conv2d_size_out(height, k, stride)
    wd1 = conv2d_size_out(width, k, stride)
    h2 = conv2d_size_out(h1, k, stride)
    wd2 = conv2d_size_out(wd1, k, stride)
    h3 = conv2d_size_out(h2, k, stride)
    wd3 = conv2d_size_out(wd2, k, stride)
    # TODO(synk): layer-3 is lowered to a single flatten-matmul, which assumes
    # the final conv map is 1x1 and the conv-3 window covers the whole layer-2
    # map (true for 16x16 boards with k=3, s=2).
    assert h3 == 1 and wd3 == 1 and h2 == k and wd2 == k, (h2, wd2, h3, wd3)

    cw1, cs1 = fold(params["l1"])            # (16, Cin, k, k)
    cw2, cs2 = fold(params["l2"])            # (32, 16, k, k)
    cw3, cs3 = fold(params["l3"])            # (32, 32, k, k)
    c1, c_in = cw1.shape[0], cw1.shape[1]
    c2, c3 = cw2.shape[0], cw3.shape[0]

    KK = k * k
    K1 = c_in * KK
    M1 = batch * h1 * wd1
    M2 = batch * h2 * wd2

    # layer-1 flat weight: rows (ci, kh, kw), matching _im2col column order.
    w1_flat = cw1.reshape(c1, K1).T                                   # (K1, c1)

    # layer-2 stacked 0/1 gather: row = t*M2 + m2 with m2 = (i*wd2+j)*B + b
    # (tap-major, spatial-major within a tap).  Baked for this batch size.
    g2 = np.zeros((KK * M2, M1), np.float32)
    for kh in range(k):
        for kw in range(k):
            t = kh * k + kw
            for b in range(batch):
                for i in range(h2):
                    for j in range(wd2):
                        m2 = (i * wd2 + j) * batch + b
                        col = (b * h1 + stride * i + kh) * wd1 + stride * j + kw
                        g2[t * M2 + m2, col] = 1.0
    w2_cat = np.transpose(cw2, (2, 3, 1, 0)).reshape(KK * c1, c2)     # (KK*c1, c2)

    # layer-3 flatten-matmul weight: rows ((kh,kw), ci).
    w3_flat = np.transpose(cw3, (2, 3, 1, 0)).reshape(KK * c2, c3)    # (KK*c2, c3)

    # head
    wh = np.asarray(params["head"]["w"], np.float32)                  # (out, c3)
    outputs = wh.shape[0]
    wh_t = wh.T                                                       # (c3, out)
    bh = np.asarray(params["head"]["b"], np.float32)

    # per-layer shifts / head bias as 4 rows of one small section
    svec = np.zeros((4, max(c1, c2, c3, outputs)), np.float32)
    svec[0, :c1] = cs1
    svec[1, :c2] = cs2
    svec[2, :c3] = cs3
    svec[3, :outputs] = bh

    # ---- pack into one lane-padded buffer, 8-row-aligned sections ----
    sections = [g2, w2_cat, w3_flat, w1_flat, wh_t, svec]
    lanes = _round_up(max(s.shape[1] for s in sections), 128)
    offs, rows = [], 0
    for s in sections:
        offs.append(rows)
        rows += _round_up(s.shape[0], 8)
    consts = np.zeros((rows, lanes), np.float32)
    for off, s in zip(offs, sections):
        consts[off:off + s.shape[0], :s.shape[1]] = s

    layout = Layout(B=batch, KK=KK, M1=M1, K1=K1, C1=c1, M2=M2, C2=c2, C3=c3,
                    OUT=outputs,
                    off_g2=offs[0], off_w2=offs[1], off_w3=offs[2],
                    off_w1=offs[3], off_wh=offs[4], off_s=offs[5])
    return jnp.asarray(consts), layout


# -------------------------- parameter construction --------------------------

def make_params(key, in_ch, kernel_size, linear_input_size, outputs):
    def bn_fold(gamma, beta, mean, var, eps=1e-5):
        scale = gamma / jnp.sqrt(var + eps)
        shift = beta - mean * scale
        return scale, shift

    params = {}
    specs = [("l1", in_ch, 16), ("l2", 16, 32), ("l3", 32, 32)]
    for name, ci, co in specs:
        key, kw, kb = jax.random.split(key, 3)
        w = jax.random.normal(kw, (co, ci, kernel_size, kernel_size),
                              jnp.float32) * 0.1
        b = jax.random.normal(kb, (co,), jnp.float32) * 0.1
        # BN eval mode: gamma=1, beta=0, running_mean=0, running_var=1
        scale, shift = bn_fold(jnp.ones((co,), jnp.float32),
                               jnp.zeros((co,), jnp.float32),
                               jnp.zeros((co,), jnp.float32),
                               jnp.ones((co,), jnp.float32))
        params[name] = {"w": w, "b": b, "scale": scale, "shift": shift}

    key, kw, kb = jax.random.split(key, 3)
    params["head"] = {
        "w": jax.random.normal(kw, (outputs, linear_input_size),
                               jnp.float32) * 0.1,
        "b": jax.random.normal(kb, (outputs,), jnp.float32) * 0.1,
    }
    return params


# ----------------------------- pure-JAX reference ---------------------------

def ref_forward(x, params, stride):
    for layer in ("l1", "l2", "l3"):
        p = params[layer]
        y = lax.conv_general_dilated(
            x, p["w"], window_strides=(stride, stride), padding="VALID",
            dimension_numbers=("NCHW", "OIHW", "NCHW"))
        y = y + p["b"][None, :, None, None]
        y = y * p["scale"][None, :, None, None] + p["shift"][None, :, None, None]
        x = jnp.maximum(y, 0.0)
    flat = x.reshape(x.shape[0], -1)
    return flat @ params["head"]["w"].T + params["head"]["b"]


# ------------------------------------ main -----------------------------------

if __name__ == "__main__":
    # env.config: INPUT_FRAME_NUM=2 -> in_channels=4, KERNEL_SIZE=3, STRIDE=2
    B, H, W = 2, 16, 16
    INPUT_FRAME_NUM, KERNEL_SIZE, STRIDE = 2, 3, 2
    IN_CH = 2 * INPUT_FRAME_NUM
    OUTPUTS = 4

    convw = conv2d_size_out(
        conv2d_size_out(conv2d_size_out(W, KERNEL_SIZE, STRIDE),
                        KERNEL_SIZE, STRIDE), KERNEL_SIZE, STRIDE)
    convh = conv2d_size_out(
        conv2d_size_out(conv2d_size_out(H, KERNEL_SIZE, STRIDE),
                        KERNEL_SIZE, STRIDE), KERNEL_SIZE, STRIDE)
    linear_input_size = convw * convh * 32

    key = jax.random.PRNGKey(0)
    key, kx = jax.random.split(key)
    x = jax.random.normal(kx, (B, IN_CH, H, W), jnp.float32)
    params = make_params(key, IN_CH, KERNEL_SIZE, linear_input_size, OUTPUTS)
    consts, layout = prepare_params(params, B, H, W, KERNEL_SIZE, STRIDE)

    out = tron_dqn_forward(x, consts, layout=layout,
                           kernel_size=KERNEL_SIZE, stride=STRIDE)
    out = jax.block_until_ready(out)

    ref = jax.block_until_ready(ref_forward(x, params, STRIDE))
    assert out.shape == (B, OUTPUTS), out.shape
    assert jnp.allclose(out, ref, atol=1e-4, rtol=1e-4), (
        "mismatch vs pure-JAX reference")

    print("KERNEL_OK")
</pallas_src>

<mosaic_0001>
module attributes {stable_mosaic.version = 11 : i64} {
  func.func @_tron_dqn_kernel(%arg0: memref<98x36xf32, #tpu.memory_space<vmem>>, %arg1: memref<680x128xf32, #tpu.memory_space<vmem>>, %arg2: memref<2x4xf32, #tpu.memory_space<vmem>>, %arg3: memref<18x144xf32, #tpu.memory_space<vmem>>, %arg4: memref<2x288xf32, #tpu.memory_space<vmem>>) attributes {dimension_semantics = [], scalar_prefetch = 0 : i64, scratch_operands = 2 : i64, tpu.core_type = #tpu.core_type<tc>} {
    %c600 = arith.constant 600 : index
    %c0 = arith.constant 0 : index
    %0 = vector.load %arg1[%c600, %c0] : memref<680x128xf32, #tpu.memory_space<vmem>>, vector<36x16xf32>
    %c672 = arith.constant 672 : index
    %c0_0 = arith.constant 0 : index
    %1 = vector.load %arg1[%c672, %c0_0] : memref<680x128xf32, #tpu.memory_space<vmem>>, vector<1x16xf32>
    %c0_1 = arith.constant 0 : index
    %c0_2 = arith.constant 0 : index
    %2 = vector.load %arg0[%c0_1, %c0_2] : memref<98x36xf32, #tpu.memory_space<vmem>>, vector<98x36xf32>
    %cst = arith.constant dense<0.000000e+00> : vector<98x16xf32>
    %3 = tpu.matmul %2, %0, %cst {dimension_numbers = #tpu.dot_dimension_numbers<[1], [0], [0], [1], [0, 0, 1, 1], [], []>} : vector<98x36xf32>, vector<36x16xf32>, vector<98x16xf32> -> vector<98x16xf32>
    %4 = vector.broadcast %1 : vector<1x16xf32> to vector<98x16xf32>
    %5 = arith.addf %3, %4 : vector<98x16xf32>
    %cst_3 = arith.constant 0.000000e+00 : f32
    %6 = vector.broadcast %cst_3 : f32 to vector<98x16xf32>
    %7 = arith.maximumf %5, %6 : vector<98x16xf32>
    %c0_4 = arith.constant 0 : index
    %c0_5 = arith.constant 0 : index
    %8 = vector.load %arg1[%c0_4, %c0_5] : memref<680x128xf32, #tpu.memory_space<vmem>>, vector<162x98xf32>
    %cst_6 = arith.constant dense<0.000000e+00> : vector<162x16xf32>
    %9 = tpu.matmul %8, %7, %cst_6 {dimension_numbers = #tpu.dot_dimension_numbers<[1], [0], [0], [1], [0, 0, 1, 1], [], []>} : vector<162x98xf32>, vector<98x16xf32>, vector<162x16xf32> -> vector<162x16xf32>
    %10 = vector.extract_strided_slice %9 {offsets = [0, 0], sizes = [18, 16], strides = [1, 1]} : vector<162x16xf32> to vector<18x16xf32>
    %c0_7 = arith.constant 0 : index
    %c0_8 = arith.constant 0 : index
    %11 = vector.load %arg3[%c0_7, %c0_8] : memref<18x144xf32, #tpu.memory_space<vmem>>, vector<18x16xf32>
    tpu.vector_store %arg3[%c0_7, %c0_8], %10 {strides = array<i32>} : memref<18x144xf32, #tpu.memory_space<vmem>>, vector<18x16xf32>,
    %12 = vector.extract_strided_slice %9 {offsets = [18, 0], sizes = [18, 16], strides = [1, 1]} : vector<162x16xf32> to vector<18x16xf32>
    %c0_9 = arith.constant 0 : index
    %c16 = arith.constant 16 : index
    %13 = vector.load %arg3[%c0_9, %c16] : memref<18x144xf32, #tpu.memory_space<vmem>>, vector<18x16xf32>
    tpu.vector_store %arg3[%c0_9, %c16], %12 {strides = array<i32>} : memref<18x144xf32, #tpu.memory_space<vmem>>, vector<18x16xf32>,
    %14 = vector.extract_strided_slice %9 {offsets = [36, 0], sizes = [18, 16], strides = [1, 1]} : vector<162x16xf32> to vector<18x16xf32>
    %c0_10 = arith.constant 0 : index
    %c32 = arith.constant 32 : index
    %15 = vector.load %arg3[%c0_10, %c32] : memref<18x144xf32, #tpu.memory_space<vmem>>, vector<18x16xf32>
    tpu.vector_store %arg3[%c0_10, %c32], %14 {strides = array<i32>} : memref<18x144xf32, #tpu.memory_space<vmem>>, vector<18x16xf32>,
    %16 = vector.extract_strided_slice %9 {offsets = [54, 0], sizes = [18, 16], strides = [1, 1]} : vector<162x16xf32> to vector<18x16xf32>
    %c0_11 = arith.constant 0 : index
    %c48 = arith.constant 48 : index
    %17 = vector.load %arg3[%c0_11, %c48] : memref<18x144xf32, #tpu.memory_space<vmem>>, vector<18x16xf32>
    tpu.vector_store %arg3[%c0_11, %c48], %16 {strides = array<i32>} : memref<18x144xf32, #tpu.memory_space<vmem>>, vector<18x16xf32>,
    %18 = vector.extract_strided_slice %9 {offsets = [72, 0], sizes = [18, 16], strides = [1, 1]} : vector<162x16xf32> to vector<18x16xf32>
    %c0_12 = arith.constant 0 : index
    %c64 = arith.constant 64 : index
    %19 = vector.load %arg3[%c0_12, %c64] : memref<18x144xf32, #tpu.memory_space<vmem>>, vector<18x16xf32>
    tpu.vector_store %arg3[%c0_12, %c64], %18 {strides = array<i32>} : memref<18x144xf32, #tpu.memory_space<vmem>>, vector<18x16xf32>,
    %20 = vector.extract_strided_slice %9 {offsets = [90, 0], sizes = [18, 16], strides = [1, 1]} : vector<162x16xf32> to vector<18x16xf32>
    %c0_13 = arith.constant 0 : index
    %c80 = arith.constant 80 : index
    %21 = vector.load %arg3[%c0_13, %c80] : memref<18x144xf32, #tpu.memory_space<vmem>>, vector<18x16xf32>
    tpu.vector_store %arg3[%c0_13, %c80], %20 {strides = array<i32>} : memref<18x144xf32, #tpu.memory_space<vmem>>, vector<18x16xf32>,
    %22 = vector.extract_strided_slice %9 {offsets = [108, 0], sizes = [18, 16], strides = [1, 1]} : vector<162x16xf32> to vector<18x16xf32>
    %c0_14 = arith.constant 0 : index
    %c96 = arith.constant 96 : index
    %23 = vector.load %arg3[%c0_14, %c96] : memref<18x144xf32, #tpu.memory_space<vmem>>, vector<18x16xf32>
    tpu.vector_store %arg3[%c0_14, %c96], %22 {strides = array<i32>} : memref<18x144xf32, #tpu.memory_space<vmem>>, vector<18x16xf32>,
    %24 = vector.extract_strided_slice %9 {offsets = [126, 0], sizes = [18, 16], strides = [1, 1]} : vector<162x16xf32> to vector<18x16xf32>
    %c0_15 = arith.constant 0 : index
    %c112 = arith.constant 112 : index
    %25 = vector.load %arg3[%c0_15, %c112] : memref<18x144xf32, #tpu.memory_space<vmem>>, vector<18x16xf32>
    tpu.vector_store %arg3[%c0_15, %c112], %24 {strides = array<i32>} : memref<18x144xf32, #tpu.memory_space<vmem>>, vector<18x16xf32>,
    %26 = vector.extract_strided_slice %9 {offsets = [144, 0], sizes = [18, 16], strides = [1, 1]} : vector<162x16xf32> to vector<18x16xf32>
    %c0_16 = arith.constant 0 : index
    %c128 = arith.constant 128 : index
    %27 = vector.load %arg3[%c0_16, %c128] : memref<18x144xf32, #tpu.memory_space<vmem>>, vector<18x16xf32>
    tpu.vector_store %arg3[%c0_16, %c128], %26 {strides = array<i32>} : memref<18x144xf32, #tpu.memory_space<vmem>>, vector<18x16xf32>,
    %c168 = arith.constant 168 : index
    %c0_17 = arith.constant 0 : index
    %28 = vector.load %arg1[%c168, %c0_17] : memref<680x128xf32, #tpu.memory_space<vmem>>, vector<144x32xf32>
    %c673 = arith.constant 673 : index
    %c0_18 = arith.constant 0 : index
    %29 = vector.load %arg1[%c673, %c0_18] : memref<680x128xf32, #tpu.memory_space<vmem>>, vector<1x32xf32>
    %c0_19 = arith.constant 0 : index
    %c0_20 = arith.constant 0 : index
    %30 = vector.load %arg3[%c0_19, %c0_20] : memref<18x144xf32, #tpu.memory_space<vmem>>, vector<18x144xf32>
    %cst_21 = arith.constant dense<0.000000e+00> : vector<18x32xf32>
    %31 = tpu.matmul %30, %28, %cst_21 {dimension_numbers = #tpu.dot_dimension_numbers<[1], [0], [0], [1], [0, 0, 1, 1], [], []>} : vector<18x144xf32>, vector<144x32xf32>, vector<18x32xf32> -> vector<18x32xf32>
    %32 = vector.broadcast %29 : vector<1x32xf32> to vector<18x32xf32>
    %33 = arith.addf %31, %32 : vector<18x32xf32>
    %cst_22 = arith.constant 0.000000e+00 : f32
    %34 = vector.broadcast %cst_22 : f32 to vector<18x32xf32>
    %35 = arith.maximumf %33, %34 : vector<18x32xf32>
    %36 = vector.extract_strided_slice %35 {offsets = [0, 0], sizes = [2, 32], strides = [1, 1]} : vector<18x32xf32> to vector<2x32xf32>
    %c0_23 = arith.constant 0 : index
    %c0_24 = arith.constant 0 : index
    %37 = vector.load %arg4[%c0_23, %c0_24] : memref<2x288xf32, #tpu.memory_space<vmem>>, vector<2x32xf32>
    tpu.vector_store %arg4[%c0_23, %c0_24], %36 {strides = array<i32>} : memref<2x288xf32, #tpu.memory_space<vmem>>, vector<2x32xf32>,
    %38 = vector.extract_strided_slice %35 {offsets = [2, 0], sizes = [2, 32], strides = [1, 1]} : vector<18x32xf32> to vector<2x32xf32>
    %c0_25 = arith.constant 0 : index
    %c32_26 = arith.constant 32 : index
    %39 = vector.load %arg4[%c0_25, %c32_26] : memref<2x288xf32, #tpu.memory_space<vmem>>, vector<2x32xf32>
    tpu.vector_store %arg4[%c0_25, %c32_26], %38 {strides = array<i32>} : memref<2x288xf32, #tpu.memory_space<vmem>>, vector<2x32xf32>,
    %40 = vector.extract_strided_slice %35 {offsets = [4, 0], sizes = [2, 32], strides = [1, 1]} : vector<18x32xf32> to vector<2x32xf32>
    %c0_27 = arith.constant 0 : index
    %c64_28 = arith.constant 64 : index
    %41 = vector.load %arg4[%c0_27, %c64_28] : memref<2x288xf32, #tpu.memory_space<vmem>>, vector<2x32xf32>
    tpu.vector_store %arg4[%c0_27, %c64_28], %40 {strides = array<i32>} : memref<2x288xf32, #tpu.memory_space<vmem>>, vector<2x32xf32>,
    %42 = vector.extract_strided_slice %35 {offsets = [6, 0], sizes = [2, 32], strides = [1, 1]} : vector<18x32xf32> to vector<2x32xf32>
    %c0_29 = arith.constant 0 : index
    %c96_30 = arith.constant 96 : index
    %43 = vector.load %arg4[%c0_29, %c96_30] : memref<2x288xf32, #tpu.memory_space<vmem>>, vector<2x32xf32>
    tpu.vector_store %arg4[%c0_29, %c96_30], %42 {strides = array<i32>} : memref<2x288xf32, #tpu.memory_space<vmem>>, vector<2x32xf32>,
    %44 = vector.extract_strided_slice %35 {offsets = [8, 0], sizes = [2, 32], strides = [1, 1]} : vector<18x32xf32> to vector<2x32xf32>
    %c0_31 = arith.constant 0 : index
    %c128_32 = arith.constant 128 : index
    %45 = vector.load %arg4[%c0_31, %c128_32] : memref<2x288xf32, #tpu.memory_space<vmem>>, vector<2x32xf32>
    tpu.vector_store %arg4[%c0_31, %c128_32], %44 {strides = array<i32>} : memref<2x288xf32, #tpu.memory_space<vmem>>, vector<2x32xf32>,
    %46 = vector.extract_strided_slice %35 {offsets = [10, 0], sizes = [2, 32], strides = [1, 1]} : vector<18x32xf32> to vector<2x32xf32>
    %c0_33 = arith.constant 0 : index
    %c160 = arith.constant 160 : index
    %47 = vector.load %arg4[%c0_33, %c160] : memref<2x288xf32, #tpu.memory_space<vmem>>, vector<2x32xf32>
    tpu.vector_store %arg4[%c0_33, %c160], %46 {strides = array<i32>} : memref<2x288xf32, #tpu.memory_space<vmem>>, vector<2x32xf32>,
    %48 = vector.extract_strided_slice %35 {offsets = [12, 0], sizes = [2, 32], strides = [1, 1]} : vector<18x32xf32> to vector<2x32xf32>
    %c0_34 = arith.constant 0 : index
    %c192 = arith.constant 192 : index
    %49 = vector.load %arg4[%c0_34, %c192] : memref<2x288xf32, #tpu.memory_space<vmem>>, vector<2x32xf32>
    tpu.vector_store %arg4[%c0_34, %c192], %48 {strides = array<i32>} : memref<2x288xf32, #tpu.memory_space<vmem>>, vector<2x32xf32>,
    %50 = vector.extract_strided_slice %35 {offsets = [14, 0], sizes = [2, 32], strides = [1, 1]} : vector<18x32xf32> to vector<2x32xf32>
    %c0_35 = arith.constant 0 : index
    %c224 = arith.constant 224 : index
    %51 = vector.load %arg4[%c0_35, %c224] : memref<2x288xf32, #tpu.memory_space<vmem>>, vector<2x32xf32>
    tpu.vector_store %arg4[%c0_35, %c224], %50 {strides = array<i32>} : memref<2x288xf32, #tpu.memory_space<vmem>>, vector<2x32xf32>,
    %52 = vector.extract_strided_slice %35 {offsets = [16, 0], sizes = [2, 32], strides = [1, 1]} : vector<18x32xf32> to vector<2x32xf32>
    %c0_36 = arith.constant 0 : index
    %c256 = arith.constant 256 : index
    %53 = vector.load %arg4[%c0_36, %c256] : memref<2x288xf32, #tpu.memory_space<vmem>>, vector<2x32xf32>
    tpu.vector_store %arg4[%c0_36, %c256], %52 {strides = array<i32>} : memref<2x288xf32, #tpu.memory_space<vmem>>, vector<2x32xf32>,
    %c312 = arith.constant 312 : index
    %c0_37 = arith.constant 0 : index
    %54 = vector.load %arg1[%c312, %c0_37] : memref<680x128xf32, #tpu.memory_space<vmem>>, vector<288x32xf32>
    %c674 = arith.constant 674 : index
    %c0_38 = arith.constant 0 : index
    %55 = vector.load %arg1[%c674, %c0_38] : memref<680x128xf32, #tpu.memory_space<vmem>>, vector<1x32xf32>
    %c0_39 = arith.constant 0 : index
    %c0_40 = arith.constant 0 : index
    %56 = vector.load %arg4[%c0_39, %c0_40] : memref<2x288xf32, #tpu.memory_space<vmem>>, vector<2x288xf32>
    %cst_41 = arith.constant dense<0.000000e+00> : vector<2x32xf32>
    %57 = tpu.matmul %56, %54, %cst_41 {dimension_numbers = #tpu.dot_dimension_numbers<[1], [0], [0], [1], [0, 0, 1, 1], [], []>} : vector<2x288xf32>, vector<288x32xf32>, vector<2x32xf32> -> vector<2x32xf32>
    %58 = vector.broadcast %55 : vector<1x32xf32> to vector<2x32xf32>
    %59 = arith.addf %57, %58 : vector<2x32xf32>
    %cst_42 = arith.constant 0.000000e+00 : f32
    %60 = vector.broadcast %cst_42 : f32 to vector<2x32xf32>
    %61 = arith.maximumf %59, %60 : vector<2x32xf32>
    %c640 = arith.constant 640 : index
    %c0_43 = arith.constant 0 : index
    %62 = vector.load %arg1[%c640, %c0_43] : memref<680x128xf32, #tpu.memory_space<vmem>>, vector<32x4xf32>
    %c675 = arith.constant 675 : index
    %c0_44 = arith.constant 0 : index
    %63 = vector.load %arg1[%c675, %c0_44] : memref<680x128xf32, #tpu.memory_space<vmem>>, vector<1x4xf32>
    %cst_45 = arith.constant dense<0.000000e+00> : vector<2x4xf32>
    %64 = tpu.matmul %61, %62, %cst_45 {dimension_numbers = #tpu.dot_dimension_numbers<[1], [0], [0], [1], [0, 0, 1, 1], [], []>} : vector<2x32xf32>, vector<32x4xf32>, vector<2x4xf32> -> vector<2x4xf32>
    %65 = vector.broadcast %63 : vector<1x4xf32> to vector<2x4xf32>
    %66 = arith.addf %64, %65 : vector<2x4xf32>
    %c0_46 = arith.constant 0 : index
    %c0_47 = arith.constant 0 : index
    %67 = vector.load %arg2[%c0_46, %c0_47] : memref<2x4xf32, #tpu.memory_space<vmem>>, vector<2x4xf32>
    tpu.vector_store %arg2[%c0_46, %c0_47], %66 {strides = array<i32>} : memref<2x4xf32, #tpu.memory_space<vmem>>, vector<2x4xf32>,
    return
  }
}

</mosaic_0001>

<bundles_post_ra>
// kernel: tron_dqn_forward.1
= control target key start
LH: loop header
LB: loop body
LE: loop exit
PB: predicated region body
PF: predicated region fallthrough
CT: control target
= control target key end

     0   :  { %vm75_vm0 = vcmask 1043456   ;;  %v1461_v1 = vmov 0.0   ;;  %vm1462_vm1 = vmmov 0   ;;  %s2038_s0 = inlined_call_operand.vmem [shape: f32[98,36], index: 0, kind: input, shape index: {}]   ;;  %s2039_s1 = inlined_call_operand.vmem [shape: f32[680,128], index: 1, kind: input, shape index: {}]   ;;  %s2040_s2 = inlined_call_operand.hbm [shape: f32[2,4], index: 2, kind: output, shape index: {}]  }
   0x1   :  { %v16_v0 = vld [vmem:[%s2039_s1 + $0x278] sm:$0xf]  ;;  %1267 = vmatprep.subr.mxu0 %v1461_v1  ;;  %v15_v2 = vld [vmem:[%s2039_s1 + $0x270] sm:$0xff]  ;;  %1316 = vmatprep.subr.mxu1 %v1461_v1  ;;  %v14_v3 = vld [vmem:[%s2039_s1 + $0x268] sm:$0xff] }
   0x2   :  { %1268 = vmatpush3.msk.msra.mxu0 %vm75_vm0, %v16_v0  ;;  %1277 = vmatprep.mubr.msk.f32.mxu0 %vm1462_vm1, %v1461_v1  ;;  %v13_v4 = vld [vmem:[%s2039_s1 + $0x260] sm:$0xff] }
   0x3   :  { %1269 = vmatprep.subr.mxu0 %v1461_v1  ;;  %1342 = vmatprep.mubr.msk.f32.mxu1 %vm1462_vm1, %v1461_v1 }
   0x4   :  { %1270 = vmatpush3.msra.mxu0 %v15_v2 }
   0x5   :  { %1271 = vmatprep.subr.mxu0 %v1461_v1 }
   0x6   :  { %1272 = vmatpush3.msra.mxu0 %v14_v3 }
   0x7   :  { %7 = vsyncpa [#allocation5], 0  ;;  %1273 = vmatprep.subr.mxu0 %v1461_v1  ;;  %v12_v5 = vld [vmem:[%s2039_s1 + $0x258] sm:$0xff]  ;;  %v18_v6 = vld [vmem:[%s2038_s0] sm:$0xff]  ;;  %vm35_vm2 = vcmask 293888   ;;  %vm307_vm3 = vcmask 1041408  }
   0x8   :  { %1274 = vmatpush3.msra.mxu0 %v13_v4  ;;  %v19_v7 = vld [vmem:[%s2038_s0 + $0x8] sm:$0xff]  ;;  %v20_v8 = vld [vmem:[%s2038_s0 + $0x10] sm:$0xff]  ;;  %v21_v9 = vld [vmem:[%s2038_s0 + $0x18] sm:$0xff]  ;;  %vm243_vm4 = vcmask 801792   ;;  %vm481_vm5 = vcmask 130048   ;;  %vm484_vm6 = vcmask 123904  }
   0x9   :  { %1275 = vmatprep.subr.mxu0 %v1461_v1  ;;  %v22_v10 = vld [vmem:[%s2038_s0 + $0x20] sm:$0xff]  ;;  %v23_v11 = vld [vmem:[%s2038_s0 + $0x28] sm:$0xff]  ;;  %v24_v12 = vld [vmem:[%s2038_s0 + $0x30] sm:$0xff]  ;;  %vm489_vm7 = vcmask 1045504   ;;  %s1463_s9 = smov 16   ;;  %s1464_s14 = smov 32  }
   0xa   :  { %1276 = vmatpush3.msra.mxu0 %v12_v5  ;;  %v25_v13 = vld [vmem:[%s2038_s0 + $0x38] sm:$0xff]  ;;  %v26_v14 = vld [vmem:[%s2038_s0 + $0x40] sm:$0xff]  ;;  %v27_v15 = vld [vmem:[%s2038_s0 + $0x48] sm:$0xff]  ;;  %s1465_s22 = smov 48   ;;  %s1466_s25 = smov 64   ;;  %vm504_vm8 = vcmask 261248  }
   0xb   :  { %1278 = vmatmul.mubr.msk.f32.vlgmr.msra.gmra.mxu0 %vm35_vm2, %v18_v6  ;;  %672 = vmatprep.subr.mxu0 %v1461_v1  ;;  %v28_v16 = vld [vmem:[%s2038_s0 + $0x50] sm:$0xff]  ;;  %v29_v17 = vld [vmem:[%s2038_s0 + $0x58] sm:$0xff]  ;;  %v30_v18 = vld [vmem:[%s2038_s0 + $0x60] sm:$0x3]  ;;  %s1467_s8 = smov 80   ;;  %s1468_s0 = smov 96  }
   0xc   :  { %1280 = vmatprep.mubr.msk.f32.mxu0 %vm1462_vm1, %v1461_v1  ;;  %v1125_v43 = vld [vmem:[%s2039_s1 + $0x2a0] ss:$0 sm:$0xff]  ;;  %s1469_s17 = smov 112   ;;  %vm525_vm9 = vcmask 392448   ;;  %vm546_vm10 = vcmask 523648   ;;  %vm563_vm11 = vcmask 654848  }
   0xd   :  { %vm584_vm12 = vcmask 786048   ;;  %vm605_vm13 = vcmask 917248   ;;  %vm626_vm14 = vcmask 1048448   ;;  %vm507_vm15 = vcmask 255104  }
   0xf   :  { %1281 = vmatmul.mubr.msk.f32.gmra.mxu0 %vm35_vm2, %v19_v7 }
  0x10   :  { %1283 = vmatprep.mubr.msk.f32.mxu0 %vm1462_vm1, %v1461_v1 }
  0x13   :  { %1284 = vmatmul.mubr.msk.f32.gmra.mxu0 %vm35_vm2, %v20_v8 }
  0x14   :  { %1286 = vmatprep.mubr.msk.f32.mxu0 %vm1462_vm1, %v1461_v1 }
  0x17   :  { %1287 = vmatmul.mubr.msk.f32.gmra.mxu0 %vm35_vm2, %v21_v9  ;;  %v222_v9 = vld [vmem:[%s2039_s1] sm:$0xff] }
  0x18   :  { %1289 = vmatprep.mubr.msk.f32.mxu0 %vm1462_vm1, %v1461_v1 }
  0x1b   :  { %1290 = vmatmul.mubr.msk.f32.gmra.mxu0 %vm35_vm2, %v22_v10  ;;  %v223_v10 = vld [vmem:[%s2039_s1 + $0x8] sm:$0xff] }
  0x1c   :  { %1292 = vmatprep.mubr.msk.f32.mxu0 %vm1462_vm1, %v1461_v1 }
  0x1f   :  { %1293 = vmatmul.mubr.msk.f32.gmra.mxu0 %vm35_vm2, %v23_v11  ;;  %v224_v11 = vld [vmem:[%s2039_s1 + $0x10] sm:$0xff] }
  0x20   :  { %1295 = vmatprep.mubr.msk.f32.mxu0 %vm1462_vm1, %v1461_v1 }
  0x23   :  { %1296 = vmatmul.mubr.msk.f32.gmra.mxu0 %vm35_vm2, %v24_v12  ;;  %v225_v12 = vld [vmem:[%s2039_s1 + $0x18] sm:$0xff] }
  0x24   :  { %1298 = vmatprep.mubr.msk.f32.mxu0 %vm1462_vm1, %v1461_v1 }
  0x27   :  { %1299 = vmatmul.mubr.msk.f32.gmra.mxu0 %vm35_vm2, %v25_v13  ;;  %v226_v13 = vld [vmem:[%s2039_s1 + $0x20] sm:$0xff] }
  0x28   :  { %1301 = vmatprep.mubr.msk.f32.mxu0 %vm1462_vm1, %v1461_v1 }
  0x2b   :  { %1302 = vmatmul.mubr.msk.f32.gmra.mxu0 %vm35_vm2, %v26_v14  ;;  %v227_v14 = vld [vmem:[%s2039_s1 + $0x28] sm:$0xff] }
  0x2c   :  { %1304 = vmatprep.mubr.msk.f32.mxu0 %vm1462_vm1, %v1461_v1 }
  0x2f   :  { %1305 = vmatmul.mubr.msk.f32.gmra.mxu0 %vm35_vm2, %v27_v15  ;;  %v228_v15 = vld [vmem:[%s2039_s1 + $0x30] sm:$0xff] }
  0x30   :  { %1307 = vmatprep.mubr.msk.f32.mxu0 %vm1462_vm1, %v1461_v1 }
  0x33   :  { %1308 = vmatmul.mubr.msk.f32.gmra.mxu0 %vm35_vm2, %v28_v16  ;;  %v229_v16 = vld [vmem:[%s2039_s1 + $0x38] sm:$0xff] }
  0x34   :  { %1310 = vmatprep.mubr.msk.f32.mxu0 %vm1462_vm1, %v1461_v1 }
  0x37   :  { %1311 = vmatmul.mubr.msk.f32.gmra.mxu0 %vm35_vm2, %v29_v17  ;;  %v230_v17 = vld [vmem:[%s2039_s1 + $0x40] sm:$0xff] }
  0x38   :  { %1313 = vmatprep.mubr.msk.f32.mxu0 %vm1462_vm1, %v1461_v1 }
  0x3b   :  { %1314 = vmatmul.mubr.msk.f32.gmra.mxu0 %vm35_vm2, %v30_v18  ;;  %v231_v18 = vld [vmem:[%s2039_s1 + $0x48] sm:$0xff]  ;;  %vm549_vm2 = vcmask 517504  }
  0xcb   :  { %v1590_v19 = vpop.f32.mrf.mxu0 }
  0xcc   :  { %v146_v5 = vadd.f32 %v1125_v43, %v1590_v19  ;;  %v232_v19 = vld [vmem:[%s2039_s1 + $0x50] sm:$0xff] }
  0xcd   :  { %v1279_v20 = vpop.f32.mrf.mxu0 }
  0xce   :  { %v209_v8 = vmax.f32 %v146_v5, 0.0  ;;  %v233_v20 = vld [vmem:[%s2039_s1 + $0x58] sm:$0xff] }
  0xcf   :  { %v150_v21 = vpop.f32.mrf.mxu0 }
  0xd0   :  { %v151_v3 = vadd.f32 %v1125_v43, %v150_v21  ;;  %v234_v21 = vld [vmem:[%s2039_s1 + $0x60] sm:$0xff] }
  0xd1   :  { %v1282_v22 = vpop.f32.mrf.mxu0 }
  0xd2   :  { %v210_v7 = vmax.f32 %v151_v3, 0.0  ;;  %v235_v22 = vld [vmem:[%s2039_s1 + $0x68] sm:$0xff]  ;;  %v641_v3 = vld [vmem:[%s2039_s1 + $0xe0] sm:$0xff] }
  0xd3   :  { %v155_v23 = vpop.f32.mrf.mxu0 }
  0xd4   :  { %v156_v0 = vadd.f32 %v1125_v43, %v155_v23  ;;  %v236_v23 = vld [vmem:[%s2039_s1 + $0x70] sm:$0xff] }
  0xd5   :  { %v1285_v24 = vpop.f32.mrf.mxu0 }
  0xd6   :  { %v211_v6 = vmax.f32 %v156_v0, 0.0  ;;  %v237_v24 = vld [vmem:[%s2039_s1 + $0x78] sm:$0xff] }
  0xd7   :  { %v160_v25 = vpop.f32.mrf.mxu0 }
  0xd8   :  { %v161_v62 = vadd.f32 %v1125_v43, %v160_v25  ;;  %v238_v25 = vld [vmem:[%s2039_s1 + $0x80] sm:$0xff] }
  0xd9   :  { %v1288_v26 = vpop.f32.mrf.mxu0 }
  0xda   :  { %v212_v4 = vmax.f32 %v161_v62, 0.0  ;;  %v239_v26 = vld [vmem:[%s2039_s1 + $0x88] sm:$0xff] }
  0xdb   :  { %v165_v27 = vpop.f32.mrf.mxu0  ;;  %v642_v62 = vld [vmem:[%s2039_s1 + $0xe8] sm:$0xff] }
  0xdc   :  { %v166_v60 = vadd.f32 %v1125_v43, %v165_v27  ;;  %v240_v27 = vld [vmem:[%s2039_s1 + $0x90] sm:$0xff] }
  0xdd   :  { %v1291_v28 = vpop.f32.mrf.mxu0 }
  0xde   :  { %v213_v2 = vmax.f32 %v166_v60, 0.0  ;;  %v241_v28 = vld [vmem:[%s2039_s1 + $0x98] sm:$0xff] }
  0xdf   :  { %v170_v29 = vpop.f32.mrf.mxu0 }
  0xe0   :  { %v171_v58 = vadd.f32 %v1125_v43, %v170_v29  ;;  %v242_v29 = vld [vmem:[%s2039_s1 + $0xa0] sm:$0x3] }
  0xe1   :  { %v1294_v30 = vpop.f32.mrf.mxu0 }
  0xe2   :  { %v214_v63 = vmax.f32 %v171_v58, 0.0 }
  0xe3   :  { %v175_v31 = vpop.f32.mrf.mxu0 }
  0xe4   :  { %v176_v56 = vadd.f32 %v1125_v43, %v175_v31 }
  0xe5   :  { %v1297_v32 = vpop.f32.mrf.mxu0 }
  0xe6   :  { %v215_v61 = vmax.f32 %v176_v56, 0.0  ;;  %v644_v56 = vld [vmem:[%s2039_s1 + $0xf8] sm:$0xff] }
  0xe7   :  { %v180_v33 = vpop.f32.mrf.mxu0 }
  0xe8   :  { %v181_v54 = vadd.f32 %v1125_v43, %v180_v33 }
  0xe9   :  { %v1300_v34 = vpop.f32.mrf.mxu0 }
  0xea   :  { %v216_v59 = vmax.f32 %v181_v54, 0.0  ;;  %v645_v54 = vld [vmem:[%s2039_s1 + $0x100] sm:$0xff] }
  0xeb   :  { %v185_v35 = vpop.f32.mrf.mxu0 }
  0xec   :  { %v186_v52 = vadd.f32 %v1125_v43, %v185_v35 }
  0xed   :  { %v1303_v36 = vpop.f32.mrf.mxu0 }
  0xee   :  { %v217_v57 = vmax.f32 %v186_v52, 0.0  ;;  %v649_v36 = vld [vmem:[%s2039_s1 + $0x120] sm:$0xff] }
  0xef   :  { %v190_v37 = vpop.f32.mrf.mxu0  ;;  %673 = vmatpush1.msra.mxu0 %v649_v36 }
  0xf0   :  { %v191_v50 = vadd.f32 %v1125_v43, %v190_v37  ;;  %v648_v37 = vld [vmem:[%s2039_s1 + $0x118] sm:$0xff]  ;;  %674 = vmatprep.subr.mxu0 %v1461_v1 }
  0xf1   :  { %v1306_v38 = vpop.f32.mrf.mxu0  ;;  %675 = vmatpush1.msra.mxu0 %v648_v37  ;;  %v650_v37 = vld [vmem:[%s2039_s1 + $0x128] sm:$0xff] }
  0xf2   :  { %v218_v55 = vmax.f32 %v191_v50, 0.0  ;;  %676 = vmatprep.subr.mxu0 %v1461_v1 }
  0xf3   :  { %v195_v39 = vpop.f32.mrf.mxu0 }
  0xf4   :  { %v196_v48 = vadd.f32 %v1125_v43, %v195_v39 }
  0xf5   :  { %v1309_v40 = vpop.f32.mrf.mxu0 }
  0xf6   :  { %v219_v53 = vmax.f32 %v196_v48, 0.0  ;;  %v646_v48 = vld [vmem:[%s2039_s1 + $0x108] sm:$0xff] }
  0xf7   :  { %v200_v41 = vpop.f32.mrf.mxu0 }
  0xf8   :  { %v201_v45 = vadd.f32 %v1125_v43, %v200_v41 }
  0xf9   :  { %v1312_v42 = vpop.f32.mrf.mxu0 }
  0xfa   :  { %v220_v51 = vmax.f32 %v201_v45, 0.0 }
  0xfb   :  { %v205_v44 = vpop.f32.mrf.mxu0 }
  0xfc   :  { %v206_v46 = vadd.f32 %v1125_v43, %v205_v44  ;;  %v647_v43 = vld [vmem:[%s2039_s1 + $0x110] sm:$0xff] }
  0xfd   :  { %v1315_v47 = vpop.f32.mrf.mxu0  ;;  %677 = vmatpush1.msra.mxu0 %v647_v43 }
  0xfe   :  { %v221_v49 = vmax.f32 %v206_v46, 0.0  ;;  %678 = vmatprep.subr.mxu0 %v1461_v1 }
  0xff   :  { %679 = vmatpush1.msra.mxu0 %v646_v48 }
 0x100   :  { %1317 = vmatpush3.msk.msra.mxu1 %vm307_vm3, %v221_v49  ;;  %680 = vmatprep.subr.mxu0 %v1461_v1 }
 0x101   :  { %1318 = vmatprep.subr.mxu1 %v1461_v1  ;;  %681 = vmatpush1.msra.mxu0 %v645_v54 }
 0x102   :  { %1319 = vmatpush3.msra.mxu1 %v220_v51  ;;  %682 = vmatprep.subr.mxu0 %v1461_v1 }
 0x103   :  { %1320 = vmatprep.subr.mxu1 %v1461_v1  ;;  %683 = vmatpush1.msra.mxu0 %v644_v56 }
 0x104   :  { %1321 = vmatpush3.msra.mxu1 %v219_v53  ;;  %684 = vmatprep.subr.mxu0 %v1461_v1 }
 0x105   :  { %1322 = vmatprep.subr.mxu1 %v1461_v1 }
 0x106   :  { %1323 = vmatpush3.msra.mxu1 %v218_v55 }
 0x107   :  { %1324 = vmatprep.subr.mxu1 %v1461_v1 }
 0x108   :  { %1325 = vmatpush3.msra.mxu1 %v217_v57 }
 0x109   :  { %1326 = vmatprep.subr.mxu1 %v1461_v1 }
 0x10a   :  { %1327 = vmatpush3.msra.mxu1 %v216_v59 }
 0x10b   :  { %1328 = vmatprep.subr.mxu1 %v1461_v1 }
 0x10c   :  { %1329 = vmatpush3.msra.mxu1 %v215_v61  ;;  %v643_v61 = vld [vmem:[%s2039_s1 + $0xf0] sm:$0xff] }
 0x10d   :  { %1330 = vmatprep.subr.mxu1 %v1461_v1  ;;  %685 = vmatpush1.msra.mxu0 %v643_v61 }
 0x10e   :  { %1331 = vmatpush3.msra.mxu1 %v214_v63  ;;  %686 = vmatprep.subr.mxu0 %v1461_v1 }
 0x10f   :  { %1332 = vmatprep.subr.mxu1 %v1461_v1  ;;  %687 = vmatpush1.msra.mxu0 %v642_v62 }
 0x110   :  { %1333 = vmatpush3.msra.mxu1 %v213_v2  ;;  %688 = vmatprep.subr.mxu0 %v1461_v1 }
 0x111   :  { %1334 = vmatprep.subr.mxu1 %v1461_v1  ;;  %689 = vmatpush1.msra.mxu0 %v641_v3 }
 0x112   :  { %1335 = vmatpush3.msra.mxu1 %v212_v4  ;;  %690 = vmatprep.subr.mxu0 %v1461_v1 }
 0x113   :  { %1336 = vmatprep.subr.mxu1 %v1461_v1 }
 0x114   :  { %1337 = vmatpush3.msra.mxu1 %v211_v6  ;;  %v640_v6 = vld [vmem:[%s2039_s1 + $0xd8] sm:$0xff] }
 0x115   :  { %1338 = vmatprep.subr.mxu1 %v1461_v1  ;;  %691 = vmatpush1.msra.mxu0 %v640_v6 }
 0x116   :  { %1339 = vmatpush3.msra.mxu1 %v210_v7  ;;  %692 = vmatprep.subr.mxu0 %v1461_v1 }
 0x117   :  { %1340 = vmatprep.subr.mxu1 %v1461_v1 }
 0x118   :  { %1341 = vmatpush3.msra.mxu1 %v209_v8 }
 0x119   :  { %1343 = vmatmul.mubr.msk.f32.vlgmr.msra.gmra.mxu1 %vm243_vm4, %v222_v9 }
 0x11a   :  { %1345 = vmatprep.mubr.msk.f32.mxu1 %vm1462_vm1, %v1461_v1 }
 0x11d   :  { %1346 = vmatmul.mubr.msk.f32.gmra.mxu1 %vm243_vm4, %v223_v10 }
 0x11e   :  { %1348 = vmatprep.mubr.msk.f32.mxu1 %vm1462_vm1, %v1461_v1 }
 0x121   :  { %1349 = vmatmul.mubr.msk.f32.gmra.mxu1 %vm243_vm4, %v224_v11 }
 0x122   :  { %1351 = vmatprep.mubr.msk.f32.mxu1 %vm1462_vm1, %v1461_v1 }
 0x125   :  { %1352 = vmatmul.mubr.msk.f32.gmra.mxu1 %vm243_vm4, %v225_v12  ;;  %v639_v12 = vld [vmem:[%s2039_s1 + $0xd0] sm:$0xff] }
 0x126   :  { %1354 = vmatprep.mubr.msk.f32.mxu1 %vm1462_vm1, %v1461_v1  ;;  %693 = vmatpush1.msra.mxu0 %v639_v12 }
 0x127   :  { %694 = vmatprep.subr.mxu0 %v1461_v1 }
 0x129   :  { %1355 = vmatmul.mubr.msk.f32.gmra.mxu1 %vm243_vm4, %v226_v13 }
 0x12a   :  { %1357 = vmatprep.mubr.msk.f32.mxu1 %vm1462_vm1, %v1461_v1 }
 0x12d   :  { %1358 = vmatmul.mubr.msk.f32.gmra.mxu1 %vm243_vm4, %v227_v14 }
 0x12e   :  { %1360 = vmatprep.mubr.msk.f32.mxu1 %vm1462_vm1, %v1461_v1 }
 0x131   :  { %1361 = vmatmul.mubr.msk.f32.gmra.mxu1 %vm243_vm4, %v228_v15  ;;  %v638_v15 = vld [vmem:[%s2039_s1 + $0xc8] sm:$0xff] }
 0x132   :  { %1363 = vmatprep.mubr.msk.f32.mxu1 %vm1462_vm1, %v1461_v1  ;;  %695 = vmatpush1.msra.mxu0 %v638_v15 }
 0x133   :  { %696 = vmatprep.subr.mxu0 %v1461_v1 }
 0x135   :  { %1364 = vmatmul.mubr.msk.f32.gmra.mxu1 %vm243_vm4, %v229_v16  ;;  %v637_v16 = vld [vmem:[%s2039_s1 + $0xc0] sm:$0xff] }
 0x136   :  { %1366 = vmatprep.mubr.msk.f32.mxu1 %vm1462_vm1, %v1461_v1  ;;  %697 = vmatpush1.msra.mxu0 %v637_v16 }
 0x137   :  { %698 = vmatprep.subr.mxu0 %v1461_v1 }
 0x139   :  { %1367 = vmatmul.mubr.msk.f32.gmra.mxu1 %vm243_vm4, %v230_v17 }
 0x13a   :  { %1369 = vmatprep.mubr.msk.f32.mxu1 %vm1462_vm1, %v1461_v1 }
 0x13d   :  { %1370 = vmatmul.mubr.msk.f32.gmra.mxu1 %vm243_vm4, %v231_v18 }
 0x13e   :  { %1372 = vmatprep.mubr.msk.f32.mxu1 %vm1462_vm1, %v1461_v1 }
 0x141   :  { %1373 = vmatmul.mubr.msk.f32.gmra.mxu1 %vm243_vm4, %v232_v19  ;;  %v636_v19 = vld [vmem:[%s2039_s1 + $0xb8] sm:$0xff] }
 0x142   :  { %1375 = vmatprep.mubr.msk.f32.mxu1 %vm1462_vm1, %v1461_v1  ;;  %699 = vmatpush1.msra.mxu0 %v636_v19 }
 0x143   :  { %700 = vmatprep.subr.mxu0 %v1461_v1 }
 0x145   :  { %1376 = vmatmul.mubr.msk.f32.gmra.mxu1 %vm243_vm4, %v233_v20 }
 0x146   :  { %1378 = vmatprep.mubr.msk.f32.mxu1 %vm1462_vm1, %v1461_v1 }
 0x149   :  { %1379 = vmatmul.mubr.msk.f32.gmra.mxu1 %vm243_vm4, %v234_v21 }
 0x14a   :  { %1381 = vmatprep.mubr.msk.f32.mxu1 %vm1462_vm1, %v1461_v1 }
 0x14d   :  { %1382 = vmatmul.mubr.msk.f32.gmra.mxu1 %vm243_vm4, %v235_v22 }
 0x14e   :  { %1384 = vmatprep.mubr.msk.f32.mxu1 %vm1462_vm1, %v1461_v1 }
 0x151   :  { %1385 = vmatmul.mubr.msk.f32.gmra.mxu1 %vm243_vm4, %v236_v23 }
 0x152   :  { %1387 = vmatprep.mubr.msk.f32.mxu1 %vm1462_vm1, %v1461_v1 }
 0x155   :  { %1388 = vmatmul.mubr.msk.f32.gmra.mxu1 %vm243_vm4, %v237_v24 }
 0x156   :  { %1390 = vmatprep.mubr.msk.f32.mxu1 %vm1462_vm1, %v1461_v1 }
 0x159   :  { %1391 = vmatmul.mubr.msk.f32.gmra.mxu1 %vm243_vm4, %v238_v25  ;;  %v635_v25 = vld [vmem:[%s2039_s1 + $0xb0] sm:$0xff] }
 0x15a   :  { %1393 = vmatprep.mubr.msk.f32.mxu1 %vm1462_vm1, %v1461_v1  ;;  %701 = vmatpush1.msra.mxu0 %v635_v25  ;;  %v851_v25 = vld [vmem:[%s2039_s1 + $0x220] sm:$0xff] }
 0x15b   :  { %702 = vmatprep.subr.mxu0 %v1461_v1 }
 0x15d   :  { %1394 = vmatmul.mubr.msk.f32.gmra.mxu1 %vm243_vm4, %v239_v26 }
 0x15e   :  { %1396 = vmatprep.mubr.msk.f32.mxu1 %vm1462_vm1, %v1461_v1 }
 0x161   :  { %1397 = vmatmul.mubr.msk.f32.gmra.mxu1 %vm243_vm4, %v240_v27 }
 0x162   :  { %1399 = vmatprep.mubr.msk.f32.mxu1 %vm1462_vm1, %v1461_v1 }
 0x165   :  { %1400 = vmatmul.mubr.msk.f32.gmra.mxu1 %vm243_vm4, %v241_v28 }
 0x166   :  { %1402 = vmatprep.mubr.msk.f32.mxu1 %vm1462_vm1, %v1461_v1 }
 0x169   :  { %1403 = vmatmul.mubr.msk.f32.gmra.mxu1 %vm243_vm4, %v242_v29  ;;  %vm587_vm4 = vcmask 779904  }
 0x1d9   :  { %v377_v30 = vpop.f32.mrf.mxu1 }
 0x1da   :  { %482 = vst.msk [vmem:[#allocation2] sm:$0xff] %vm481_vm5, %v377_v30  ;;  %v634_v30 = vld [vmem:[%s2039_s1 + $0xa8] sm:$0xff] }
 0x1db   :  { %v1344_v31 = vpop.f32.mrf.mxu1  ;;  %703 = vmatpush1.msra.mxu0 %v634_v30 }
 0x1dc   :  { %v651_v31 = vld [vmem:[%s2039_s1 + $0x130] sm:$0xff]  ;;  %732 = vmatprep.subr.mxu0 %v1461_v1 }
 0x1dd   :  { %v382_v32 = vpop.f32.mrf.mxu1  ;;  %733 = vmatpush2.msra.mxu0 %v651_v31  ;;  %v761_v31 = vlaneseq }
 0x1de   :  { %483 = vst.msk [vmem:[#allocation2 + $0x10] sm:$0xff] %vm481_vm5, %v382_v32  ;;  %734 = vmatprep.subr.mxu0 %v1461_v1 }
 0x1df   :  { %v1347_v33 = vpop.f32.mrf.mxu1  ;;  %735 = vmatpush2.msra.mxu0 %v650_v37  ;;  %v762_v37 = vshrl.u32 %v761_v31, 7  ;;  %v855_v31 = vld [vmem:[%s2039_s1 + $0x240] sm:$0xff] }
 0x1e1   :  { %v387_v34 = vpop.f32.mrf.mxu1 }
 0x1e2   :  { %485 = vst.msk [vmem:[#allocation2 + $0x20] sm:$0x3] %vm484_vm6, %v387_v34  ;;  %v490_v39 = vrot.slane %v387_v34, 2 }
 0x1e3   :  { %v1350_v35 = vpop.f32.mrf.mxu1 }
 0x1e5   :  { %v392_v38 = vpop.f32.mrf.mxu1 }
 0x1e6   :  { %v491_v40 = vrot.slane %v392_v38, 2 }
 0x1e7   :  { %v1353_v41 = vpop.f32.mrf.mxu1 }
 0x1e8   :  { %v492_v42 = vsel %vm489_vm7, %v490_v39, %v491_v40 }
 0x1e9   :  { %495 = vrot.lane.b32.xlu0 %v492_v42, %s1463_s9  ;;  %v1749_v44 = vpop.f32.mrf.mxu1 }
 0x1ea   :  { %v493_v45 = vrot.slane %v1749_v44, 2  ;;  %v511_v50 = vrot.slane %v1749_v44, 4 }
 0x1eb   :  { %v1356_v46 = vpop.f32.mrf.mxu1 }
 0x1ec   :  { %v494_v47 = vsel %vm489_vm7, %v491_v40, %v493_v45 }
 0x1ed   :  { %497 = vrot.lane.b32.xlu0 %v494_v47, %s1463_s9  ;;  %v402_v49 = vpop.f32.mrf.mxu1 }
 0x1ee   :  { %v512_v51 = vrot.slane %v402_v49, 4 }
 0x1ef   :  { %v1359_v52 = vpop.f32.mrf.mxu1 }
 0x1f0   :  { %v513_v53 = vsel %vm75_vm0, %v511_v50, %v512_v51 }
 0x1f1   :  { %516 = vrot.lane.b32.xlu0 %v513_v53, %s1464_s14  ;;  %v1767_v55 = vpop.f32.mrf.mxu1 }
 0x1f2   :  { %v514_v57 = vrot.slane %v1767_v55, 4  ;;  %v532_v63 = vrot.slane %v1767_v55, 6 }
 0x1f3   :  { %v1362_v58 = vpop.f32.mrf.mxu1 }
 0x1f4   :  { %v515_v59 = vsel %vm75_vm0, %v512_v51, %v514_v57 }
 0x1f5   :  { %518 = vrot.lane.b32.xlu0 %v515_v59, %s1464_s14  ;;  %v412_v60 = vpop.f32.mrf.mxu1 }
 0x1f6   :  { %v533_v0 = vrot.slane %v412_v60, 6 }
 0x1f7   :  { %v1365_v2 = vpop.f32.mrf.mxu1 }
 0x1f8   :  { %v534_v4 = vsel %vm307_vm3, %v532_v63, %v533_v0 }
 0x1f9   :  { %537 = vrot.lane.b32.xlu1 %v534_v4, %s1465_s22  ;;  %v1792_v5 = vpop.f32.mrf.mxu1 }
 0x1fa   :  { %v535_v7 = vrot.slane %v1792_v5, 6 }
 0x1fb   :  { %v1368_v8 = vpop.f32.mrf.mxu1 }
 0x1fc   :  { %v536_v9 = vsel %vm307_vm3, %v533_v0, %v535_v7 }
 0x1fd   :  { %539 = vrot.lane.b32.xlu0 %v536_v9, %s1465_s22  ;;  %v422_v10 = vpop.f32.mrf.mxu1 }
 0x1fe   :  { %554 = vrot.lane.b32.xlu1 %v422_v10, %s1466_s25 }
 0x1ff   :  { %v1371_v11 = vpop.f32.mrf.mxu1 }
 0x201   :  { %v427_v13 = vpop.f32.mrf.mxu1 }
 0x202   :  { %556 = vrot.lane.b32.xlu0 %v427_v13, %s1466_s25 }
 0x203   :  { %v1374_v14 = vpop.f32.mrf.mxu1 }
 0x205   :  { %v1817_v17 = vpop.f32.mrf.mxu1 }
 0x206   :  { %v570_v21 = vrot.slane %v1817_v17, 2 }
 0x207   :  { %v1377_v18 = vpop.f32.mrf.mxu1 }
 0x209   :  { %v437_v20 = vpop.f32.mrf.mxu1 }
 0x20a   :  { %v571_v22 = vrot.slane %v437_v20, 2 }
 0x20b   :  { %v1380_v23 = vpop.f32.mrf.mxu1 }
 0x20c   :  { %v572_v24 = vsel %vm489_vm7, %v570_v21, %v571_v22  ;;  %v853_v21 = vld [vmem:[%s2039_s1 + $0x230] sm:$0xff]  ;;  %v852_v23 = vld [vmem:[%s2039_s1 + $0x228] sm:$0xff] }
 0x20d   :  { %575 = vrot.lane.b32.xlu1 %v572_v24, %s1467_s8  ;;  %v442_v26 = vpop.f32.mrf.mxu1  ;;  %1222 = vmatprep.subr.mxu0 %v853_v21  ;;  %v836_v24 = vld [vmem:[%s2039_s1 + $0x1a8] sm:$0xff] }
 0x20e   :  { %v573_v27 = vrot.slane %v442_v26, 2  ;;  %v591_v33 = vrot.slane %v442_v26, 4  ;;  %v835_v26 = vld [vmem:[%s2039_s1 + $0x1a0] sm:$0xff] }
 0x20f   :  { %v1383_v28 = vpop.f32.mrf.mxu1 }
 0x210   :  { %v574_v29 = vsel %vm489_vm7, %v571_v22, %v573_v27  ;;  %vm629_vm7 = vcmask 1042304   ;;  %v837_v22 = vld [vmem:[%s2039_s1 + $0x1b0] sm:$0xff]  ;;  %v834_v28 = vld [vmem:[%s2039_s1 + $0x198] sm:$0xff] }
 0x211   :  { %577 = vrot.lane.b32.xlu1 %v574_v29, %s1467_s8  ;;  %v447_v32 = vpop.f32.mrf.mxu1  ;;  %v1470_v29 = vmov 1983009808  }
 0x212   :  { %v592_v34 = vrot.slane %v447_v32, 4  ;;  %v759_v30 = vunpack.c.l.s4 %v1470_v29  ;;  %v849_v32 = vld [vmem:[%s2039_s1 + $0x210] sm:$0xff]  ;;  %v856_v29 = vld [vmem:[%s2039_s1 + $0x248] sm:$0xff] }
 0x213   :  { %v1386_v35 = vpop.f32.mrf.mxu1 }
 0x214   :  { %v593_v36 = vsel %vm75_vm0, %v591_v33, %v592_v34  ;;  %v833_v33 = vld [vmem:[%s2039_s1 + $0x190] sm:$0xff]  ;;  %v832_v35 = vld [vmem:[%s2039_s1 + $0x188] sm:$0xff] }
 0x215   :  { %596 = vrot.lane.b32.xlu1 %v593_v36, %s1468_s0  ;;  %v452_v38 = vpop.f32.mrf.mxu1  ;;  %v760_v36 = vunpack.c.0.s8 %v759_v30 }
 0x216   :  { %v594_v39 = vrot.slane %v452_v38, 4  ;;  %v612_v43 = vrot.slane %v452_v38, 6  ;;  %v1909_v38 = vld [vmem:[%s2039_s1 + $0x2a1] ss:$0 sm:$0xff] }
 0x217   :  { %v1389_v40 = vpop.f32.mrf.mxu1 }
 0x218   :  { %v595_v41 = vsel %vm75_vm0, %v592_v34, %v594_v39  ;;  %vm528_vm0 = vcmask 386304   ;;  %v848_v34 = vld [vmem:[%s2039_s1 + $0x208] sm:$0xff] }
 0x219   :  { %598 = vrot.lane.b32.xlu0 %v595_v41, %s1468_s0  ;;  %v457_v42 = vpop.f32.mrf.mxu1  ;;  %v831_v41 = vld [vmem:[%s2039_s1 + $0x180] sm:$0xff] }
 0x21a   :  { %v613_v46 = vrot.slane %v457_v42, 6  ;;  %v846_v42 = vld [vmem:[%s2039_s1 + $0x1f8] sm:$0xff] }
 0x21b   :  { %v1392_v47 = vpop.f32.mrf.mxu1 }
 0x21c   :  { %v614_v48 = vsel %vm307_vm3, %v612_v43, %v613_v46  ;;  %v830_v43 = vld [vmem:[%s2039_s1 + $0x178] sm:$0xff]  ;;  %v1924_v47 = vsub.s32 %v760_v36, %v762_v37  ;;  %v1028_v36 = vld [vmem:[%s2039_s1 + $0x288] sm:$0xff]  ;;  %v1027_v37 = vld [vmem:[%s2039_s1 + $0x280] sm:$0xff] }
 0x21d   :  { %499 = vrot.lane.b32.xlu0 %v493_v45, %s1463_s9  ;;  %617 = vrot.lane.b32.xlu1 %v614_v48, %s1469_s17  ;;  %v462_v49 = vpop.f32.mrf.mxu1 }
 0x21e   :  { %v615_v50 = vrot.slane %v462_v49, 6 }
 0x21f   :  { %v1395_v51 = vpop.f32.mrf.mxu1 }
 0x220   :  { %v616_v52 = vsel %vm307_vm3, %v613_v46, %v615_v50  ;;  %vm566_vm3 = vcmask 648704  }
 0x221   :  { %541 = vrot.lane.b32.xlu0 %v535_v7, %s1465_s22  ;;  %619 = vrot.lane.b32.xlu1 %v616_v52, %s1469_s17  ;;  %v467_v53 = vpop.f32.mrf.mxu1  ;;  %v829_v52 = vld [vmem:[%s2039_s1 + $0x170] sm:$0xff]  ;;  %s1471_s22 = smov [#allocation4]  }
 0x222   :  { %631 = vst.msk [vmem:[#allocation2 + $0x8] sm:$0xff] %vm481_vm5, %v467_v53  ;;  %v844_v53 = vld [vmem:[%s2039_s1 + $0x1e8] sm:$0xff]  ;;  %s1117_s23 = sshll.u32 %s1471_s22, 4  ;;  %s1118_s23 = int_to_ptr.vmem [resolvable:$true] %s1117_s23 }
 0x223   :  { %v1398_v54 = vpop.f32.mrf.mxu1  ;;  %s1439_s24 = scalar_lea.vmem %s1118_s23, 32  ;;  %p1444_p1 = scmp.lt.s32.totalorder %s1118_s23, %s1118_s23 }
 0x224   :  { %v828_v54 = vld [vmem:[%s2039_s1 + $0x168] sm:$0xff]  ;;  %p1440_p0 = scmp.ne.s32.totalorder %s1118_s23, %s1439_s24  ;;  %p1445_p2 = scmp.lt.s32.totalorder %s1439_s24, %s1439_s24 }
 0x225   :  { %579 = vrot.lane.b32.xlu0 %v573_v27, %s1467_s8  ;;  %520 = vrot.lane.b32.xlu1 %v514_v57, %s1464_s14  ;;  %v472_v44 = vpop.f32.mrf.mxu1  ;;  %v850_v27 = vld [vmem:[%s2039_s1 + $0x218] sm:$0xff] }
 0x226   :  { %632 = vst.msk [vmem:[#allocation2 + $0x18] sm:$0xff] %vm481_vm5, %v472_v44  ;;  %p1446_p3 = por %p1445_p2, %p1444_p1 }
 0x227   :  { %v1401_v45 = vpop.f32.mrf.mxu1 }
 0x228   :  { %p1447_p4 = pnand %p1446_p3, %p1440_p0 }
 0x229   :  { %621 = vrot.lane.b32.xlu0 %v615_v50, %s1469_s17  ;;  %558 = vrot.lane.b32.xlu1 %v1817_v17, %s1466_s25  ;;  %v654_v56 = vld [vmem:[#allocation2 + $0x8] sm:$0xff]  ;;  %v477_v58 = vpop.f32.mrf.mxu1  ;;  %v845_v50 = vld [vmem:[%s2039_s1 + $0x1f0] sm:$0xff] }
 0x22a   :  { %1163 = vmatprep.mubr.msk.f32.mxu0 %vm481_vm5, %v654_v56  ;;  %633 = vst.msk [vmem:[#allocation2 + $0x28] sm:$0x3] %vm484_vm6, %v477_v58  ;;  %vm608_vm6 = vcmask 911104  }
 0x22b   :  { %v1404_v59 = vpop.f32.mrf.mxu1 }
 0x22d   :  { %600 = vrot.lane.b32.xlu1 %v594_v39, %s1468_s0  ;;  %v656_v11 = vld [vmem:[#allocation2 + $0x18] sm:$0xff]  ;;  %v847_v39 = vld [vmem:[%s2039_s1 + $0x200] sm:$0xff] }
 0x231   :  { %v658_v15 = vld [vmem:[#allocation2 + $0x28] sm:$0x3] }
 0x25b   :  { %v496_v55 = vpop.permute.xlu0 %495 }
 0x25c   :  { %505 = vst.msk [vmem:[#allocation2] sm:$0xff] %vm504_vm8, %v496_v55 }
 0x25f   :  { %v498_v57 = vpop.permute.xlu0 %497 }
 0x260   :  { %506 = vst.msk [vmem:[#allocation2 + $0x10] sm:$0xff] %vm504_vm8, %v498_v57  ;;  %v843_v57 = vld [vmem:[%s2039_s1 + $0x1e0] sm:$0xff]  ;;  %vm769_vm8 = vcmask 517376  }
 0x263   :  { %v517_v60 = vpop.permute.xlu0 %516 }
 0x264   :  { %526 = vst.msk [vmem:[#allocation2] sm:$0xff] %vm525_vm9, %v517_v60  ;;  %v827_v60 = vld [vmem:[%s2039_s1 + $0x160] sm:$0xff] }
 0x267   :  { %v519_v61 = vpop.permute.xlu0 %518 }
 0x268   :  { %527 = vst.msk [vmem:[#allocation2 + $0x10] sm:$0xff] %vm525_vm9, %v519_v61  ;;  %v842_v61 = vld [vmem:[%s2039_s1 + $0x1d8] sm:$0xff]  ;;  %vm782_vm9 = vcmask 779776  }
 0x26b   :  { %v538_v62 = vpop.permute.xlu1 %537 }
 0x26c   :  { %547 = vst.msk [vmem:[#allocation2] sm:$0xff] %vm546_vm10, %v538_v62  ;;  %v826_v62 = vld [vmem:[%s2039_s1 + $0x158] sm:$0xff] }
 0x26f   :  { %v540_v63 = vpop.permute.xlu0 %539 }
 0x270   :  { %548 = vst.msk [vmem:[#allocation2 + $0x10] sm:$0xff] %vm546_vm10, %v540_v63  ;;  %v555_v0 = vpop.permute.xlu1 %554  ;;  %vm788_vm10 = vcmask 1042176  }
 0x271   :  { %564 = vst.msk [vmem:[#allocation2] sm:$0xff] %vm563_vm11, %v555_v0  ;;  %v841_v0 = vld [vmem:[%s2039_s1 + $0x1d0] sm:$0xff] }
 0x274   :  { %v557_v2 = vpop.permute.xlu0 %556 }
 0x275   :  { %565 = vst.msk [vmem:[#allocation2 + $0x10] sm:$0xff] %vm563_vm11, %v557_v2  ;;  %vm883_vm11 = vcmask 261120  }
 0x27f   :  { %v576_v3 = vpop.permute.xlu1 %575 }
 0x280   :  { %585 = vst.msk [vmem:[#allocation2] sm:$0xff] %vm584_vm12, %v576_v3 }
 0x283   :  { %v578_v4 = vpop.permute.xlu1 %577 }
 0x284   :  { %586 = vst.msk [vmem:[#allocation2 + $0x10] sm:$0xff] %vm584_vm12, %v578_v4 }
 0x287   :  { %v597_v5 = vpop.permute.xlu1 %596 }
 0x288   :  { %606 = vst.msk [vmem:[#allocation2] sm:$0xff] %vm605_vm13, %v597_v5  ;;  %v825_v5 = vld [vmem:[%s2039_s1 + $0x150] sm:$0xff] }
 0x28b   :  { %v599_v6 = vpop.permute.xlu0 %598 }
 0x28c   :  { %607 = vst.msk [vmem:[#allocation2 + $0x10] sm:$0xff] %vm605_vm13, %v599_v6  ;;  %v840_v6 = vld [vmem:[%s2039_s1 + $0x1c8] sm:$0xff] }
 0x28f   :  { %v500_v7 = vpop.permute.xlu0 %499  ;;  %v618_v8 = vpop.permute.xlu1 %617 }
 0x290   :  { %627 = vst.msk [vmem:[#allocation2] sm:$0xff] %vm626_vm14, %v618_v8 }
 0x291   :  { %508 = vst.msk [vmem:[#allocation2 + $0x20] sm:$0x3] %vm507_vm15, %v500_v7  ;;  %v824_v7 = vld [vmem:[%s2039_s1 + $0x148] sm:$0xff] }
 0x293   :  { %v620_v9 = vpop.permute.xlu1 %619  ;;  %v542_v10 = vpop.permute.xlu0 %541 }
 0x294   :  { %628 = vst.msk [vmem:[#allocation2 + $0x10] sm:$0xff] %vm626_vm14, %v620_v9 }
 0x297   :  { %v521_v12 = vpop.permute.xlu1 %520  ;;  %v653_v13 = vld [vmem:[#allocation2] sm:$0xff]  ;;  %v580_v14 = vpop.permute.xlu0 %579 }
 0x298   :  { %737 = vmatmul.mubr.f32.vlgmr.msra.gmra.mxu0 %v653_v13  ;;  %529 = vst.msk [vmem:[#allocation2 + $0x20] sm:$0x3] %vm528_vm0, %v521_v12  ;;  %v838_v13 = vld [vmem:[%s2039_s1 + $0x1b8] sm:$0xff] }
 0x299   :  { %1164 = vmatprep.mubr.msk.f32.mxu0 %vm481_vm5, %v656_v11  ;;  %550 = vst.msk [vmem:[#allocation2 + $0x20] sm:$0x3] %vm549_vm2, %v542_v10  ;;  %1223 = vmatpush3.msra.mxu0 %v837_v22  ;;  %v839_v10 = vld [vmem:[%s2039_s1 + $0x1c0] sm:$0xff] }
 0x29a   :  { %1224 = vmatprep.subr.mxu0 %v852_v23  ;;  %v823_v11 = vld [vmem:[%s2039_s1 + $0x140] sm:$0xff] }
 0x29b   :  { %v559_v16 = vpop.permute.xlu1 %558  ;;  %v655_v17 = vld [vmem:[#allocation2 + $0x10] sm:$0xff]  ;;  %v622_v19 = vpop.permute.xlu0 %621  ;;  %1225 = vmatpush3.msra.mxu0 %v836_v24 }
 0x29c   :  { %742 = vmatmul.mubr.f32.gmra.mxu0 %v655_v17  ;;  %567 = vst.msk [vmem:[#allocation2 + $0x20] sm:$0x3] %vm566_vm3, %v559_v16  ;;  %1226 = vmatprep.subr.mxu0 %v851_v25 }
 0x29d   :  { %588 = vst.msk [vmem:[#allocation2 + $0x20] sm:$0x3] %vm587_vm4, %v580_v14  ;;  %1165 = vmatprep.mubr.msk.f32.mxu0 %vm481_vm5, %v658_v15  ;;  %1227 = vmatpush3.msra.mxu0 %v835_v26  ;;  %vm755_vm5 = vcmask 254976   ;;  %v822_v15 = vld [vmem:[%s2039_s1 + $0x138] sm:$0xff] }
 0x29e   :  { %1228 = vmatprep.subr.mxu0 %v850_v27 }
 0x29f   :  { %v601_v18 = vpop.permute.xlu1 %600  ;;  %1229 = vmatpush3.msra.mxu0 %v834_v28  ;;  %v857_v28 = vld [vmem:[%s2039_s1 + $0x250] sm:$0xff] }
 0x2a0   :  { %609 = vst.msk [vmem:[#allocation2 + $0x20] sm:$0x3] %vm608_vm6, %v601_v18  ;;  %1230 = vmatprep.subr.mxu0 %v849_v32  ;;  %v854_v32 = vld [vmem:[%s2039_s1 + $0x238] sm:$0xff] }
 0x2a1   :  { %630 = vst.msk [vmem:[#allocation2 + $0x20] sm:$0x3] %vm629_vm7, %v622_v19  ;;  %1231 = vmatpush3.msra.mxu0 %v833_v33 }
 0x2a2   :  { %1232 = vmatprep.subr.mxu0 %v848_v34  ;;  %v1030_v34 = vld [vmem:[%s2039_s1 + $0x298] sm:$0xff] }
 0x2a3   :  { %1233 = vmatpush3.msra.mxu0 %v832_v35  ;;  %v1029_v35 = vld [vmem:[%s2039_s1 + $0x290] sm:$0xff] }
 0x2a4   :  { %1234 = vmatprep.subr.mxu0 %v847_v39 }
 0x2a5   :  { %1235 = vmatpush3.msra.mxu0 %v831_v41 }
 0x2a6   :  { %1236 = vmatprep.subr.mxu0 %v846_v42 }
 0x2a7   :  { %1237 = vmatpush3.msra.mxu0 %v830_v43 }
 0x2a8   :  { %v657_v20 = vld [vmem:[#allocation2 + $0x20] sm:$0x3]  ;;  %1238 = vmatprep.subr.mxu0 %v845_v50 }
 0x2a9   :  { %747 = vmatmul.mubr.f32.gmra.mxu0 %v657_v20 }
 0x2aa   :  { %1239 = vmatpush3.msra.mxu0 %v829_v52 }
 0x2ab   :  { %1240 = vmatprep.subr.mxu0 %v844_v53 }
 0x2ac   :  { %1241 = vmatpush3.msra.mxu0 %v828_v54 }
 0x2ad   :  { %1242 = vmatprep.subr.mxu0 %v843_v57 }
 0x2ae   :  { %1243 = vmatpush3.msra.mxu0 %v827_v60 }
 0x2af   :  { %1244 = vmatprep.subr.mxu0 %v842_v61 }
 0x2b0   :  { %1245 = vmatpush3.msra.mxu0 %v826_v62 }
 0x2b1   :  { %1246 = vmatprep.subr.mxu0 %v841_v0 }
 0x2b2   :  { %1247 = vmatpush3.msra.mxu0 %v825_v5 }
 0x2b3   :  { %1248 = vmatprep.subr.mxu0 %v840_v6 }
 0x2b4   :  { %1249 = vmatpush3.msra.mxu0 %v824_v7 }
 0x2b5   :  { %1250 = vmatprep.subr.mxu0 %v839_v10 }
 0x2b6   :  { %1251 = vmatpush3.msra.mxu0 %v823_v11 }
 0x2b7   :  { %1252 = vmatprep.subr.mxu0 %v838_v13 }
 0x2b8   :  { %1253 = vmatpush3.msra.mxu0 %v822_v15 }
 0x2b9   :  { %1405 = vmatprep.subr.mxu0 %v1461_v1 }
 0x358   :  { %v738_v40 = vpop.f32.mrf.mxu0 }
 0x359   :  { %v739_v46 = vadd.f32 %v1909_v38, %v738_v40  ;;  %v1166_v40 = vld [vmem:[%s2039_s1 + $0x2a2] ss:$0 sm:$0xff] }
 0x35a   :  { %v740_v48 = vpop.f32.mrf.mxu0 }
 0x35b   :  { %v752_v49 = vmax.f32 %v739_v46, 0.0 }
 0x35c   :  { %v743_v51 = vpop.f32.mrf.mxu0 }
 0x35d   :  { %v744_v44 = vadd.f32 %v1909_v38, %v743_v51  ;;  %v764_v45 = vrot.slane %v752_v49, %v1924_v47  ;;  %756 = vst.msk [vmem:[#allocation3] sm:$0x3] %vm755_vm5, %v752_v49  ;;  %v771_v58 = vcombine.high %v752_v49, %v752_v49 }
 0x35e   :  { %v745_v56 = vpop.f32.mrf.mxu0 }
 0x35f   :  { %v753_v59 = vmax.f32 %v744_v44, 0.0  ;;  %v765_v55 = vcombine.high %v764_v45, %v764_v45  ;;  %v778_v4 = vrot.slane %v771_v58, %v1924_v47 }
 0x361   :  { %766 = vrot.lane.b32.xlu1 %v765_v55, %s1464_s14  ;;  %v798_v63 = vrot.slane %v753_v59, %v1924_v47  ;;  %790 = vst.msk [vmem:[#allocation3 + $0x2] sm:$0x3] %vm755_vm5, %v753_v59  ;;  %v804_v2 = vcombine.high %v753_v59, %v753_v59  ;;  %v784_v9 = vcombine.high %v778_v4, %v778_v4 }
 0x363   :  { %v799_v3 = vcombine.high %v798_v63, %v798_v63  ;;  %v811_v8 = vrot.slane %v804_v2, %v1924_v47 }
 0x365   :  { %800 = vrot.lane.b32.xlu0 %v799_v3, %s1464_s14  ;;  %779 = vrot.lane.b32.xlu1 %v778_v4, %s1466_s25  ;;  %v816_v17 = vcombine.high %v811_v8, %v811_v8 }
 0x369   :  { %v748_v12 = vpop.f32.mrf.mxu0  ;;  %812 = vrot.lane.b32.xlu0 %v811_v8, %s1466_s25  ;;  %785 = vrot.lane.b32.xlu1 %v784_v9, %s1468_s0 }
 0x36a   :  { %v749_v14 = vadd.f32 %v1909_v38, %v748_v12 }
 0x36b   :  { %v750_v16 = vpop.f32.mrf.mxu0 }
 0x36c   :  { %v754_v18 = vmax.f32 %v749_v14, 0.0 }
 0x36d   :  { %817 = vrot.lane.b32.xlu0 %v816_v17, %s1468_s0 }
 0x36e   :  { %821 = vst.msk [vmem:[#allocation3 + $0x4] sm:$0x3] %vm755_vm5, %v754_v18 }
 0x3d3   :  { %v767_v19 = vpop.permute.xlu1 %766 }
 0x3d4   :  { %770 = vst.msk [vmem:[#allocation3] sm:$0x3] %vm769_vm8, %v767_v19 }
 0x3d7   :  { %v801_v20 = vpop.permute.xlu0 %800  ;;  %v780_v21 = vpop.permute.xlu1 %779 }
 0x3d8   :  { %803 = vst.msk [vmem:[#allocation3 + $0x2] sm:$0x3] %vm769_vm8, %v801_v20 }
 0x3d9   :  { %783 = vst.msk [vmem:[#allocation3] sm:$0x3] %vm782_vm9, %v780_v21 }
 0x3db   :  { %v813_v22 = vpop.permute.xlu0 %812  ;;  %v786_v23 = vpop.permute.xlu1 %785 }
 0x3dc   :  { %815 = vst.msk [vmem:[#allocation3 + $0x2] sm:$0x3] %vm782_vm9, %v813_v22 }
 0x3dd   :  { %789 = vst.msk [vmem:[#allocation3] sm:$0x3] %vm788_vm10, %v786_v23 }
 0x3df   :  { %v818_v24 = vpop.permute.xlu0 %817 }
 0x3e0   :  { %820 = vst.msk [vmem:[#allocation3 + $0x2] sm:$0x3] %vm788_vm10, %v818_v24 }
 0x3e7   :  { %v859_v25 = vld [vmem:[#allocation3] sm:$0x3f] }
 0x3e8   :  { %v872_v26 = vrot.slane %v859_v25, %v1924_v47  ;;  %v865_v30 = vcombine.high %v859_v25, %v859_v25 }
 0x3ea   :  { %v880_v27 = vcombine.high %v872_v26, %v872_v26  ;;  %v879_v33 = vrot.slane %v865_v30, %v1924_v47 }
 0x3ec   :  { %950 = vmatprep.mubr.f32.mxu0 %v880_v27 }
 0x3ed   :  { %951 = vmatmul.mubr.f32.vlgmr.msra.gmra.mxu0 %v872_v26 }
 0x3ee   :  { %1406 = vmatpush3.msra.mxu0 %v857_v28  ;;  %1413 = vmatprep.mubr.msk.f32.mxu0 %vm1462_vm1, %v1461_v1 }
 0x3ef   :  { %1407 = vmatprep.subr.mxu0 %v1461_v1 }
 0x3f0   :  { %1408 = vmatpush3.msra.mxu0 %v856_v29 }
 0x3f1   :  { %1409 = vmatprep.subr.mxu0 %v1461_v1 }
 0x3f2   :  { %1410 = vmatpush3.msra.mxu0 %v855_v31 }
 0x3f3   :  { %1411 = vmatprep.subr.mxu0 %v1461_v1 }
 0x3f4   :  { %1412 = vmatpush3.msra.mxu0 %v854_v32 }
 0x3f5   :  { %1414 = vmatmul.mubr.msk.f32.vlgmr.msra.gmra.mxu0 %vm883_vm11, %v879_v33  ;;  %1416 = vmatprep.subr.mxu0 %v1461_v1 }
 0x3f6   :  { %1424 = vmatprep.mubr.msk.f32.mxu0 %vm1462_vm1, %v1461_v1  ;;  %1417 = vmatpush3.msra.mxu0 %v1030_v34  ;;  %vm1109_vm1 = vcmask 25600  }
 0x3f7   :  { %1418 = vmatprep.subr.mxu0 %v1461_v1 }
 0x3f8   :  { %1419 = vmatpush3.msra.mxu0 %v1029_v35 }
 0x3f9   :  { %1420 = vmatprep.subr.mxu0 %v1461_v1 }
 0x3fa   :  { %1421 = vmatpush3.msra.mxu0 %v1028_v36 }
 0x3fb   :  { %1422 = vmatprep.subr.mxu0 %v1461_v1  ;;  %v1168_v1 = vld [vmem:[%s2039_s1 + $0x2a3] ss:$0 sm:$0xff] }
 0x3fc   :  { %1423 = vmatpush3.msra.mxu0 %v1027_v37 }
 0x4ad   :  { %v1254_v38 = vpop.f32.mrf.mxu0 }
 0x4af   :  { %v1255_v39 = vpop.f32.mrf.mxu0 }
 0x4b0   :  { %v1256_v41 = vadd.f32 %v1255_v39, %v1254_v38 }
 0x4b2   :  { %v953_v42 = vadd.f32 %v1256_v41, %v1166_v40 }
 0x4b5   :  { %v1022_v43 = vpop.f32.mrf.mxu0 }
 0x4b6   :  { %v1023_v46 = vadd.f32 %v1022_v43, %v953_v42 }
 0x4b7   :  { %v1415_v47 = vpop.f32.mrf.mxu0 }
 0x4b8   :  { %v1026_v48 = vmax.f32 %v1023_v46, 0.0 }
 0x4ba   :  { %1425 = vmatmul.mubr.msk.f32.vlgmr.msra.gmra.mxu0 %vm883_vm11, %v1026_v48 }
 0x57a   :  { %v1105_v49 = vpop.f32.mrf.mxu0 }
 0x57b   :  { %v1106_v50 = vadd.f32 %v1168_v1, %v1105_v49 }
 0x57c   :  { %v1426_v51 = vpop.f32.mrf.mxu0 }
 0x57d   :  { %1110 = vst.msk [vmem:[#allocation4] sm:$0x3] %vm1109_vm1, %v1106_v50 }
 0x57e   :  { %1450 = shalt.err (!%p1447_p4)
}
 0x57f   :  { %1120 = dma.vmem_to_hbm [thread:$0]  %s1118_s23, 32, %s2040_s2, [#allocation5]  }
 0x580   :  { %1459 = dma.done.wait [#allocation5], 32  }
 0x581   :  { %1460 = vsyncadd [#allocation5], 4294967264 }
 0x582   :  { %1124 = vsyncpa [#allocation5], 1 }

</bundles_post_ra>
